<compile_context>
chip_gen: v6e
topology: v6e:2x2x1
jax: 0.10.0
libtpu: 0.0.40
codegen_flags: <defaults>
</compile_context>

<pallas_src>
import functools

import jax
import jax.numpy as jnp
from jax import lax
from jax.experimental import pallas as pl
from jax.experimental.pallas import tpu as pltpu

_LANE = 128   # TPU lane width (hidden/output padding target)
_SUB = 128    # in-kernel batch sub-tile (rows per fori_loop iteration)


def _round_up(x, m):
    return (x + m - 1) // m * m


def _dqn_kernel(x_ref, w1_ref, b1_ref, w2_ref, b2_ref, w3_ref, b3_ref, o_ref,
                *, n_sub):
    """Fused MLP over one batch block, sub-tiled in _SUB-row chunks.

    Matmul inputs are w*_ref.dtype (bf16 or f32); accumulation / bias / relu
    are f32; activations are re-cast to the matmul dtype between layers.
    """
    act_dtype = w2_ref.dtype

    def body(t, carry):
        r = pl.multiple_of(t * _SUB, _SUB)
        x = x_ref[pl.ds(r, _SUB), :]
        h1 = jnp.dot(x, w1_ref[...], preferred_element_type=jnp.float32) + b1_ref[...]
        h1 = jnp.maximum(h1, 0.0).astype(act_dtype)
        h2 = jnp.dot(h1, w2_ref[...], preferred_element_type=jnp.float32) + b2_ref[...]
        h2 = jnp.maximum(h2, 0.0).astype(act_dtype)
        out = jnp.dot(h2, w3_ref[...], preferred_element_type=jnp.float32) + b3_ref[...]
        o_ref[pl.ds(r, _SUB), :] = out.astype(o_ref.dtype)
        return carry

    lax.fori_loop(0, n_sub, body, 0, unroll=True)


def prepare_dqn_params(params, use_bf16_matmul=True):
    """Pad hidden/output dims to 128 lanes and cast weights once (not per call).

    Weights are [in_features, out_features] (transposed from PyTorch's
    [out, in]) so the kernel computes x @ W + b.  Zero padding + relu(0)=0 is
    exact; biases stay f32 (bias/relu math is f32 on all generations).
    """
    w1, b1, w2, b2, w3, b3 = (params[k] for k in ("w1", "b1", "w2", "b2", "w3", "b3"))
    in_dim, hid = w1.shape
    out_dim = w3.shape[1]
    hid_p = _round_up(hid, _LANE)
    out_p = _round_up(out_dim, _LANE)
    mm_dtype = jnp.bfloat16 if use_bf16_matmul else jnp.float32

    w1p = jnp.zeros((in_dim, hid_p), mm_dtype).at[:, :hid].set(w1.astype(mm_dtype))
    b1p = jnp.zeros((1, hid_p), jnp.float32).at[:, :hid].set(b1)
    w2p = jnp.zeros((hid_p, hid_p), mm_dtype).at[:hid, :hid].set(w2.astype(mm_dtype))
    b2p = jnp.zeros((1, hid_p), jnp.float32).at[:, :hid].set(b2)
    w3p = jnp.zeros((hid_p, out_p), mm_dtype).at[:hid, :out_dim].set(w3.astype(mm_dtype))
    b3p = jnp.zeros((1, out_p), jnp.float32).at[:, :out_dim].set(b3)
    return {"w1": w1p, "b1": b1p, "w2": w2p, "b2": b2p, "w3": w3p, "b3": b3p}


@functools.partial(jax.jit, static_argnames=("out_dim", "block_b"))
def dqn_forward(x, prepped, out_dim, block_b=1024):
    """x: [B, input_size] float32. prepped: output of prepare_dqn_params."""
    w1p, b1p, w2p, b2p, w3p, b3p = (
        prepped[k] for k in ("w1", "b1", "w2", "b2", "w3", "b3"))
    B, in_dim = x.shape
    hid_p = w1p.shape[1]
    out_p = w3p.shape[1]
    mm_dtype = w1p.dtype
    out_dtype = jnp.float32 if mm_dtype == jnp.float32 else jnp.bfloat16

    # ---- block/grid selection: >=2 (even) grid steps, each a multiple of _SUB,
    # capped at ~block_b rows so v5e's default scoped VMEM is never at risk. ----
    bb_cap = max(_SUB, _round_up(min(block_b, 2048), _SUB))
    n_blocks = max(2, pl.cdiv(B, bb_cap))
    if n_blocks % 2:
        n_blocks += 1
    bb = _round_up(pl.cdiv(B, n_blocks), _SUB)
    B_pad = n_blocks * bb
    n_sub = bb // _SUB

    xk = x.astype(mm_dtype)
    if B_pad != B:
        # Only materialize the pad when the batch doesn't divide evenly.
        xk = jnp.zeros((B_pad, in_dim), mm_dtype).at[:B, :].set(xk)

    # Advisory cost hint for XLA scheduling around the custom call.
    flops = 2 * B_pad * (in_dim * hid_p + hid_p * hid_p + hid_p * out_p)
    bytes_accessed = (
        xk.size * xk.dtype.itemsize
        + B_pad * out_p * jnp.dtype(out_dtype).itemsize
        + sum(a.size * a.dtype.itemsize for a in (w1p, b1p, w2p, b2p, w3p, b3p))
    )
    cost = pl.CostEstimate(flops=flops, transcendentals=0,
                           bytes_accessed=bytes_accessed)

    out_padded = pl.pallas_call(
        functools.partial(_dqn_kernel, n_sub=n_sub),
        out_shape=jax.ShapeDtypeStruct((B_pad, out_p), out_dtype),
        grid_spec=pl.GridSpec(
            grid=(n_blocks,),
            in_specs=[
                pl.BlockSpec((bb, in_dim), lambda i: (i, 0)),      # x tile
                pl.BlockSpec((in_dim, hid_p), lambda i: (0, 0)),   # w1 (grid-invariant)
                pl.BlockSpec((1, hid_p), lambda i: (0, 0)),        # b1
                pl.BlockSpec((hid_p, hid_p), lambda i: (0, 0)),    # w2
                pl.BlockSpec((1, hid_p), lambda i: (0, 0)),        # b2
                pl.BlockSpec((hid_p, out_p), lambda i: (0, 0)),    # w3
                pl.BlockSpec((1, out_p), lambda i: (0, 0)),        # b3
            ],
            out_specs=pl.BlockSpec((bb, out_p), lambda i: (i, 0)),  # lane-dense output
        ),
        compiler_params=pltpu.CompilerParams(
            dimension_semantics=("parallel",),  # shards batch blocks across TCs
        ),
        cost_estimate=cost,
    )(xk, w1p, b1p, w2p, b2p, w3p, b3p)

    # Strip batch / output-lane padding; return f32 Q-values.
    return out_padded[:B, :out_dim].astype(jnp.float32)


def init_dqn_params(key, input_size, output_size, hidden=64):
    """Deterministic init mirroring nn.Linear defaults: U(-1/sqrt(fan_in), +)."""
    ks = jax.random.split(key, 6)

    def linear(kw, kb, fan_in, fan_out):
        bound = 1.0 / jnp.sqrt(jnp.float32(fan_in))
        w = jax.random.uniform(kw, (fan_in, fan_out), jnp.float32, -bound, bound)
        b = jax.random.uniform(kb, (1, fan_out), jnp.float32, -bound, bound)
        return w, b

    w1, b1 = linear(ks[0], ks[1], input_size, hidden)
    w2, b2 = linear(ks[2], ks[3], hidden, hidden)
    w3, b3 = linear(ks[4], ks[5], hidden, output_size)
    return {"w1": w1, "b1": b1, "w2": w2, "b2": b2, "w3": w3, "b3": b3}


def dqn_reference(x, p):
    h1 = jnp.maximum(x @ p["w1"] + p["b1"], 0.0)
    h2 = jnp.maximum(h1 @ p["w2"] + p["b2"], 0.0)
    return h2 @ p["w3"] + p["b3"]


if __name__ == "__main__":
    key = jax.random.PRNGKey(0)
    input_size, output_size = 16, 4
    batch = 256  # two 128-row grid steps -> pipelined / dual-TC on v7x

    kx, kp = jax.random.split(key)
    x = jax.random.normal(kx, (batch, input_size), jnp.float32)
    params = init_dqn_params(kp, input_size, output_size)
    ref = dqn_reference(x, params)

    # Exact f32 path.
    prepped_f32 = prepare_dqn_params(params, use_bf16_matmul=False)
    out_f32 = jax.block_until_ready(
        dqn_forward(x, prepped_f32, out_dim=output_size))
    assert out_f32.shape == (batch, output_size), out_f32.shape
    assert jnp.allclose(out_f32, ref, atol=1e-5, rtol=1e-5), "f32 mismatch vs reference"

    # Default fast path: bf16 MXU inputs/activations, f32 accumulation, bf16 store.
    prepped_bf16 = prepare_dqn_params(params, use_bf16_matmul=True)
    out_bf16 = jax.block_until_ready(
        dqn_forward(x, prepped_bf16, out_dim=output_size))
    assert out_bf16.shape == (batch, output_size), out_bf16.shape
    assert jnp.allclose(out_bf16, ref, atol=1e-1, rtol=1e-1), "bf16 mismatch vs reference"

    print("KERNEL_OK")
</pallas_src>

<mosaic_0001>
module attributes {stable_mosaic.version = 11 : i64} {
  func.func @_dqn_kernel(%arg0: i32, %arg1: memref<128x16xf32, #tpu.memory_space<vmem>>, %arg2: memref<16x128xf32, #tpu.memory_space<vmem>>, %arg3: memref<1x128xf32, #tpu.memory_space<vmem>>, %arg4: memref<128x128xf32, #tpu.memory_space<vmem>>, %arg5: memref<1x128xf32, #tpu.memory_space<vmem>>, %arg6: memref<128x128xf32, #tpu.memory_space<vmem>>, %arg7: memref<1x128xf32, #tpu.memory_space<vmem>>, %arg8: memref<128x128xf32, #tpu.memory_space<vmem>>) attributes {dimension_semantics = [#tpu.dimension_semantics<parallel>], iteration_bounds = array<i64: 2>, scalar_prefetch = 0 : i64, scratch_operands = 0 : i64, tpu.core_type = #tpu.core_type<tc>, window_params = [{transform_indices = @transform_0, window_bounds = array<i64: 128, 16>}, {pipeline_mode = #tpu.pipeline_mode<synchronous>, transform_indices = @transform_1, window_bounds = array<i64: 16, 128>}, {pipeline_mode = #tpu.pipeline_mode<synchronous>, transform_indices = @transform_2, window_bounds = array<i64: 1, 128>}, {pipeline_mode = #tpu.pipeline_mode<synchronous>, transform_indices = @transform_3, window_bounds = array<i64: 128, 128>}, {pipeline_mode = #tpu.pipeline_mode<synchronous>, transform_indices = @transform_4, window_bounds = array<i64: 1, 128>}, {pipeline_mode = #tpu.pipeline_mode<synchronous>, transform_indices = @transform_5, window_bounds = array<i64: 128, 128>}, {pipeline_mode = #tpu.pipeline_mode<synchronous>, transform_indices = @transform_6, window_bounds = array<i64: 1, 128>}, {transform_indices = @transform_7, window_bounds = array<i64: 128, 128>}]} {
    %c0_i32 = arith.constant 0 : i32
    %c128_i32 = arith.constant 128 : i32
    %0 = arith.muli %c0_i32, %c128_i32 : i32
    %1 = tpu.assume_multiple %0, 128 : i32
    %2 = arith.index_cast %1 : i32 to index
    %c0 = arith.constant 0 : index
    %3 = vector.load %arg1[%2, %c0] : memref<128x16xf32, #tpu.memory_space<vmem>>, vector<128x16xf32>
    %c0_0 = arith.constant 0 : index
    %c0_1 = arith.constant 0 : index
    %4 = vector.load %arg2[%c0_0, %c0_1] : memref<16x128xf32, #tpu.memory_space<vmem>>, vector<16x128xf32>
    %cst = arith.constant dense<0.000000e+00> : vector<128x128xf32>
    %5 = tpu.matmul %3, %4, %cst {dimension_numbers = #tpu.dot_dimension_numbers<[1], [0], [0], [1], [0, 0, 1, 1], [], []>} : vector<128x16xf32>, vector<16x128xf32>, vector<128x128xf32> -> vector<128x128xf32>
    %c0_2 = arith.constant 0 : index
    %c0_3 = arith.constant 0 : index
    %6 = vector.load %arg3[%c0_2, %c0_3] : memref<1x128xf32, #tpu.memory_space<vmem>>, vector<1x128xf32>
    %7 = vector.broadcast %6 : vector<1x128xf32> to vector<128x128xf32>
    %8 = arith.addf %5, %7 : vector<128x128xf32>
    %cst_4 = arith.constant 0.000000e+00 : f32
    %9 = vector.broadcast %cst_4 : f32 to vector<128x128xf32>
    %10 = arith.maximumf %8, %9 : vector<128x128xf32>
    %c0_5 = arith.constant 0 : index
    %c0_6 = arith.constant 0 : index
    %11 = vector.load %arg4[%c0_5, %c0_6] : memref<128x128xf32, #tpu.memory_space<vmem>>, vector<128x128xf32>
    %cst_7 = arith.constant dense<0.000000e+00> : vector<128x128xf32>
    %12 = tpu.matmul %10, %11, %cst_7 {dimension_numbers = #tpu.dot_dimension_numbers<[1], [0], [0], [1], [0, 0, 1, 1], [], []>} : vector<128x128xf32>, vector<128x128xf32>, vector<128x128xf32> -> vector<128x128xf32>
    %c0_8 = arith.constant 0 : index
    %c0_9 = arith.constant 0 : index
    %13 = vector.load %arg5[%c0_8, %c0_9] : memref<1x128xf32, #tpu.memory_space<vmem>>, vector<1x128xf32>
    %14 = vector.broadcast %13 : vector<1x128xf32> to vector<128x128xf32>
    %15 = arith.addf %12, %14 : vector<128x128xf32>
    %cst_10 = arith.constant 0.000000e+00 : f32
    %16 = vector.broadcast %cst_10 : f32 to vector<128x128xf32>
    %17 = arith.maximumf %15, %16 : vector<128x128xf32>
    %c0_11 = arith.constant 0 : index
    %c0_12 = arith.constant 0 : index
    %18 = vector.load %arg6[%c0_11, %c0_12] : memref<128x128xf32, #tpu.memory_space<vmem>>, vector<128x128xf32>
    %cst_13 = arith.constant dense<0.000000e+00> : vector<128x128xf32>
    %19 = tpu.matmul %17, %18, %cst_13 {dimension_numbers = #tpu.dot_dimension_numbers<[1], [0], [0], [1], [0, 0, 1, 1], [], []>} : vector<128x128xf32>, vector<128x128xf32>, vector<128x128xf32> -> vector<128x128xf32>
    %c0_14 = arith.constant 0 : index
    %c0_15 = arith.constant 0 : index
    %20 = vector.load %arg7[%c0_14, %c0_15] : memref<1x128xf32, #tpu.memory_space<vmem>>, vector<1x128xf32>
    %21 = vector.broadcast %20 : vector<1x128xf32> to vector<128x128xf32>
    %22 = arith.addf %19, %21 : vector<128x128xf32>
    %23 = arith.index_cast %1 : i32 to index
    %c0_16 = arith.constant 0 : index
    %24 = vector.load %arg8[%23, %c0_16] : memref<128x128xf32, #tpu.memory_space<vmem>>, vector<128x128xf32>
    tpu.vector_store %arg8[%23, %c0_16], %22 {strides = array<i32>} : memref<128x128xf32, #tpu.memory_space<vmem>>, vector<128x128xf32>,
    %c1_i32 = arith.constant 1 : i32
    return
  }
  func.func @transform_0(%arg0: i32) -> (i32, i32) {
    %c0_i32 = arith.constant 0 : i32
    %c0_i32_0 = arith.constant 0 : i32
    return %arg0, %c0_i32 : i32, i32
  }
  func.func @transform_1(%arg0: i32) -> (i32, i32) {
    %c0_i32 = arith.constant 0 : i32
    %c0_i32_0 = arith.constant 0 : i32
    %c0_i32_1 = arith.constant 0 : i32
    return %c0_i32, %c0_i32_0 : i32, i32
  }
  func.func @transform_2(%arg0: i32) -> (i32, i32) {
    %c0_i32 = arith.constant 0 : i32
    %c0_i32_0 = arith.constant 0 : i32
    %c0_i32_1 = arith.constant 0 : i32
    return %c0_i32, %c0_i32_0 : i32, i32
  }
  func.func @transform_3(%arg0: i32) -> (i32, i32) {
    %c0_i32 = arith.constant 0 : i32
    %c0_i32_0 = arith.constant 0 : i32
    %c0_i32_1 = arith.constant 0 : i32
    return %c0_i32, %c0_i32_0 : i32, i32
  }
  func.func @transform_4(%arg0: i32) -> (i32, i32) {
    %c0_i32 = arith.constant 0 : i32
    %c0_i32_0 = arith.constant 0 : i32
    %c0_i32_1 = arith.constant 0 : i32
    return %c0_i32, %c0_i32_0 : i32, i32
  }
  func.func @transform_5(%arg0: i32) -> (i32, i32) {
    %c0_i32 = arith.constant 0 : i32
    %c0_i32_0 = arith.constant 0 : i32
    %c0_i32_1 = arith.constant 0 : i32
    return %c0_i32, %c0_i32_0 : i32, i32
  }
  func.func @transform_6(%arg0: i32) -> (i32, i32) {
    %c0_i32 = arith.constant 0 : i32
    %c0_i32_0 = arith.constant 0 : i32
    %c0_i32_1 = arith.constant 0 : i32
    return %c0_i32, %c0_i32_0 : i32, i32
  }
  func.func @transform_7(%arg0: i32) -> (i32, i32) {
    %c0_i32 = arith.constant 0 : i32
    %c0_i32_0 = arith.constant 0 : i32
    return %arg0, %c0_i32 : i32, i32
  }
}

</mosaic_0001>

<bundles_post_ra>
// kernel: dqn_forward.1
= control target key start
LH: loop header
LB: loop body
LE: loop exit
PB: predicated region body
PF: predicated region fallthrough
CT: control target
= control target key end

     0   :  { %s1249_s24 = smov 0   ;;  %s1436_s0 = inlined_call_operand.vmem [shape: f32[256,16], index: 0, kind: input, shape index: {}]   ;;  %s1437_s1 = inlined_call_operand.vmem [shape: f32[16,128], index: 1, kind: input, shape index: {}]   ;;  %s1438_s2 = inlined_call_operand.vmem [shape: f32[1,128], index: 2, kind: input, shape index: {}]   ;;  %s1439_s3 = inlined_call_operand.vmem [shape: f32[128,128], index: 3, kind: input, shape index: {}]   ;;  %s1440_s4 = inlined_call_operand.vmem [shape: f32[1,128], index: 4, kind: input, shape index: {}]   ;;  %s1441_s5 = inlined_call_operand.vmem [shape: f32[128,128], index: 5, kind: input, shape index: {}]   ;;  %s1442_s6 = inlined_call_operand.vmem [shape: f32[1,128], index: 6, kind: input, shape index: {}]   ;;  %s1443_s7 = inlined_call_operand.vmem [shape: f32[256,128], index: 7, kind: output, shape index: {}]  }
   0x1 LB: > { %s941_s25 = sadd.s32 4294967295, %s1207_s24   ;;  %p945_p0 = scmp.ge.s32.totalorder %s1207_s24, 1  ;;  %s1207_s24 = sphi %s1249_s24, %s17_s24  }
   0x2   : > { %p238_p1 = scmp.lt.s32.totalorder %s1207_s24, 3 }
   0x4   : > { %p239_p2 = pnand %p945_p0, %p238_p1 }
   0x5   : > { %s946_s30 = sshll.u32 (!%p239_p2), %s941_s25, 4 }
   0x6   : > { %242 = sbr.rel (%p239_p2) target bundleno = 643 (0x283), region = 48  ;;  %p271_p3 = scmp.lt.s32.totalorder (!%p239_p2), %s946_s30, 31 }
   0xb   : > { %v299_v0 = vld [vmem:[%s1437_s1 + $0x8] sm:$0xff]  ;;  %v298_v1 = vld [vmem:[%s1437_s1] sm:$0xff]  ;;  %v532_v2 = vld [vmem:[%s1439_s3 + $0x78] sm:$0xff]  ;;  %s1445_s30 = smov (!%p271_p3, %s946_s30), 31  ;;  %vm307_vm0 = vcmask 130048  }
   0xc   : > { %1053 = vmatprep.subr.mxu0 %v299_v0  ;;  %1081 = vmatprep.subr.mxu1 %v532_v2  ;;  %v531_v3 = vld [vmem:[%s1439_s3 + $0x70] sm:$0xff]  ;;  %v530_v4 = vld [vmem:[%s1439_s3 + $0x68] sm:$0xff]  ;;  %v529_v5 = vld [vmem:[%s1439_s3 + $0x60] sm:$0xff]  ;;  %s947_s16 = sshll.u32 %s1445_s30, 3 }
   0xd   : > { %1054 = vmatpush3.msra.mxu0 %v299_v0  ;;  %1082 = vmatpush3.msra.mxu1 %v532_v2  ;;  %s1283_s19 = scalar_lea.vmem %s1436_s0, %s947_s16  ;;  %v528_v6 = vld [vmem:[%s1439_s3 + $0x58] sm:$0xff]  ;;  %v527_v10 = vld [vmem:[%s1439_s3 + $0x50] sm:$0xff]  ;;  %v526_v12 = vld [vmem:[%s1439_s3 + $0x48] sm:$0xff]  ;;  %s1415_s25 = scalar_lea.vmem %s1443_s7, %s947_s16 }
   0xe   : > { %1055 = vmatprep.subr.mxu0 %v298_v1  ;;  %1083 = vmatprep.subr.mxu1 %v531_v3  ;;  %v282_v7 = vld [vmem:[%s1283_s19] sm:$0xff]  ;;  %v283_v8 = vld [vmem:[%s1283_s19 + $0x8] sm:$0xff]  ;;  %v284_v9 = vld [vmem:[%s1283_s19 + $0x10] sm:$0xff] }
   0xf   : > { %1056 = vmatpush3.msra.mxu0 %v298_v1  ;;  %1084 = vmatpush3.msra.mxu1 %v531_v3  ;;  %v285_v11 = vld [vmem:[%s1283_s19 + $0x18] sm:$0xff]  ;;  %v286_v13 = vld [vmem:[%s1283_s19 + $0x20] sm:$0xff]  ;;  %v287_v15 = vld [vmem:[%s1283_s19 + $0x28] sm:$0xff] }
  0x10   : > { %1085 = vmatprep.subr.mxu1 %v530_v4  ;;  %1057 = vmatprep.mubr.msk.f32.mxu0 %vm307_vm0, %v282_v7  ;;  %v525_v14 = vld [vmem:[%s1439_s3 + $0x40] sm:$0xff]  ;;  %v524_v16 = vld [vmem:[%s1439_s3 + $0x38] sm:$0xff]  ;;  %v288_v17 = vld [vmem:[%s1283_s19 + $0x30] sm:$0xff] }
  0x11   : > { %1086 = vmatpush3.msra.mxu1 %v530_v4  ;;  %1058 = vmatmul.mubr.msk.f32.vlgmr.msra.gmra.mxu0 %vm307_vm0, %v283_v8  ;;  %v523_v18 = vld [vmem:[%s1439_s3 + $0x30] sm:$0xff]  ;;  %v289_v19 = vld [vmem:[%s1283_s19 + $0x38] sm:$0xff]  ;;  %v522_v20 = vld [vmem:[%s1439_s3 + $0x28] sm:$0xff] }
  0x12   : > { %1087 = vmatprep.subr.mxu1 %v529_v5  ;;  %1060 = vmatprep.mubr.msk.f32.mxu0 %vm307_vm0, %v284_v9  ;;  %v290_v21 = vld [vmem:[%s1283_s19 + $0x40] sm:$0xff]  ;;  %v291_v23 = vld [vmem:[%s1283_s19 + $0x48] sm:$0xff]  ;;  %v292_v24 = vld [vmem:[%s1283_s19 + $0x50] sm:$0xff] }
  0x13   : > { %1088 = vmatpush3.msra.mxu1 %v529_v5  ;;  %v521_v22 = vld [vmem:[%s1439_s3 + $0x20] sm:$0xff]  ;;  %v293_v25 = vld [vmem:[%s1283_s19 + $0x58] sm:$0xff]  ;;  %v295_v27 = vld [vmem:[%s1283_s19 + $0x68] sm:$0xff] }
  0x14   : > { %1089 = vmatprep.subr.mxu1 %v528_v6  ;;  %v294_v26 = vld [vmem:[%s1283_s19 + $0x60] sm:$0xff]  ;;  %v296_v28 = vld [vmem:[%s1283_s19 + $0x70] sm:$0xff]  ;;  %v297_v29 = vld [vmem:[%s1283_s19 + $0x78] sm:$0xff] }
  0x15   : > { %1090 = vmatpush3.msra.mxu1 %v528_v6  ;;  %1061 = vmatmul.mubr.msk.f32.gmra.mxu0 %vm307_vm0, %v285_v11  ;;  %v520_v30 = vld [vmem:[%s1439_s3 + $0x18] sm:$0xff]  ;;  %v519_v31 = vld [vmem:[%s1439_s3 + $0x10] sm:$0xff]  ;;  %v518_v32 = vld [vmem:[%s1439_s3 + $0x8] sm:$0xff] }
  0x16   : > { %1091 = vmatprep.subr.mxu1 %v527_v10  ;;  %1063 = vmatprep.mubr.msk.f32.mxu0 %vm307_vm0, %v286_v13  ;;  %v517_v33 = vld [vmem:[%s1439_s3] sm:$0xff]  ;;  %v716_v34 = vld [vmem:[%s1441_s5 + $0x78] sm:$0xff]  ;;  %v715_v35 = vld [vmem:[%s1441_s5 + $0x70] sm:$0xff] }
  0x17   : > { %1092 = vmatpush3.msra.mxu1 %v527_v10  ;;  %1137 = vmatprep.subr.mxu0 %v716_v34  ;;  %v714_v36 = vld [vmem:[%s1441_s5 + $0x68] sm:$0xff]  ;;  %v713_v37 = vld [vmem:[%s1441_s5 + $0x60] sm:$0xff]  ;;  %v712_v38 = vld [vmem:[%s1441_s5 + $0x58] sm:$0xff] }
  0x18   : > { %1093 = vmatprep.subr.mxu1 %v526_v12  ;;  %1138 = vmatpush3.msra.mxu0 %v716_v34  ;;  %v711_v39 = vld [vmem:[%s1441_s5 + $0x50] sm:$0xff]  ;;  %v710_v40 = vld [vmem:[%s1441_s5 + $0x48] sm:$0xff]  ;;  %v709_v41 = vld [vmem:[%s1441_s5 + $0x40] sm:$0xff] }
  0x19   : > { %1094 = vmatpush3.msra.mxu1 %v526_v12  ;;  %1064 = vmatmul.mubr.msk.f32.gmra.mxu0 %vm307_vm0, %v287_v15  ;;  %v708_v42 = vld [vmem:[%s1441_s5 + $0x38] sm:$0xff]  ;;  %v707_v43 = vld [vmem:[%s1441_s5 + $0x30] sm:$0xff]  ;;  %v706_v44 = vld [vmem:[%s1441_s5 + $0x28] sm:$0xff] }
  0x1a   : > { %1095 = vmatprep.subr.mxu1 %v525_v14  ;;  %1066 = vmatprep.mubr.msk.f32.mxu0 %vm307_vm0, %v288_v17  ;;  %v705_v45 = vld [vmem:[%s1441_s5 + $0x20] sm:$0xff]  ;;  %v704_v46 = vld [vmem:[%s1441_s5 + $0x18] sm:$0xff] }
  0x1b   : > { %1096 = vmatpush3.msra.mxu1 %v525_v14  ;;  %1139 = vmatprep.subr.mxu0 %v715_v35  ;;  %v950_v47 = vld [vmem:[%s1438_s2] ss:$0 sm:$0xff] }
  0x1c   : > { %1097 = vmatprep.subr.mxu1 %v524_v16  ;;  %1140 = vmatpush3.msra.mxu0 %v715_v35  ;;  %v701_v34 = vld [vmem:[%s1441_s5] sm:$0xff] }
  0x1d   : > { %1098 = vmatpush3.msra.mxu1 %v524_v16  ;;  %1067 = vmatmul.mubr.msk.f32.gmra.mxu0 %vm307_vm0, %v289_v19  ;;  %v967_v35 = vld [vmem:[%s1440_s4] ss:$0 sm:$0xff] }
  0x1e   : > { %1099 = vmatprep.subr.mxu1 %v523_v18  ;;  %1069 = vmatprep.mubr.msk.f32.mxu0 %vm307_vm0, %v290_v21 }
  0x1f   : > { %1100 = vmatpush3.msra.mxu1 %v523_v18  ;;  %1141 = vmatprep.subr.mxu0 %v714_v36 }
  0x20   : > { %1101 = vmatprep.subr.mxu1 %v522_v20  ;;  %1142 = vmatpush3.msra.mxu0 %v714_v36 }
  0x21   : > { %1102 = vmatpush3.msra.mxu1 %v522_v20  ;;  %1070 = vmatmul.mubr.msk.f32.gmra.mxu0 %vm307_vm0, %v291_v23 }
  0x22   : > { %1103 = vmatprep.subr.mxu1 %v521_v22  ;;  %1072 = vmatprep.mubr.msk.f32.mxu0 %vm307_vm0, %v292_v24 }
  0x23   : > { %1104 = vmatpush3.msra.mxu1 %v521_v22  ;;  %1143 = vmatprep.subr.mxu0 %v713_v37 }
  0x24   : > { %1105 = vmatprep.subr.mxu1 %v520_v30  ;;  %1144 = vmatpush3.msra.mxu0 %v713_v37 }
  0x25   : > { %1073 = vmatmul.mubr.msk.f32.gmra.mxu0 %vm307_vm0, %v293_v25  ;;  %1106 = vmatpush3.msra.mxu1 %v520_v30 }
  0x26   : > { %1075 = vmatprep.mubr.msk.f32.mxu0 %vm307_vm0, %v294_v26  ;;  %1107 = vmatprep.subr.mxu1 %v519_v31 }
  0x27   : > { %1108 = vmatpush3.msra.mxu1 %v519_v31  ;;  %1145 = vmatprep.subr.mxu0 %v712_v38 }
  0x28   : > { %1109 = vmatprep.subr.mxu1 %v518_v32  ;;  %1146 = vmatpush3.msra.mxu0 %v712_v38 }
  0x29   : > { %1076 = vmatmul.mubr.msk.f32.gmra.mxu0 %vm307_vm0, %v295_v27  ;;  %1110 = vmatpush3.msra.mxu1 %v518_v32  ;;  %v703_v32 = vld [vmem:[%s1441_s5 + $0x10] sm:$0xff] }
  0x2a   : > { %1078 = vmatprep.mubr.msk.f32.mxu0 %vm307_vm0, %v296_v28  ;;  %1111 = vmatprep.subr.mxu1 %v517_v33 }
  0x2b   : > { %1112 = vmatpush3.msra.mxu1 %v517_v33  ;;  %1147 = vmatprep.subr.mxu0 %v711_v39  ;;  %v702_v33 = vld [vmem:[%s1441_s5 + $0x8] sm:$0xff] }
  0x2c   : > { %1148 = vmatpush3.msra.mxu0 %v711_v39 }
  0x2d   : > { %1079 = vmatmul.mubr.msk.f32.gmra.mxu0 %vm307_vm0, %v297_v29  ;;  %1149 = vmatprep.subr.mxu0 %v710_v40 }
  0x2e   : > { %1150 = vmatpush3.msra.mxu0 %v710_v40 }
  0x2f   : > { %1151 = vmatprep.subr.mxu0 %v709_v41 }
  0x30   : > { %1152 = vmatpush3.msra.mxu0 %v709_v41 }
  0x31   : > { %1153 = vmatprep.subr.mxu0 %v708_v42 }
  0x32   : > { %1154 = vmatpush3.msra.mxu0 %v708_v42 }
  0x33   : > { %1155 = vmatprep.subr.mxu0 %v707_v43 }
  0x34   : > { %1156 = vmatpush3.msra.mxu0 %v707_v43 }
  0x35   : > { %1157 = vmatprep.subr.mxu0 %v706_v44 }
  0x36   : > { %1158 = vmatpush3.msra.mxu0 %v706_v44 }
  0x37   : > { %1159 = vmatprep.subr.mxu0 %v705_v45 }
  0x38   : > { %1160 = vmatpush3.msra.mxu0 %v705_v45 }
  0x39   : > { %1161 = vmatprep.subr.mxu0 %v704_v46 }
  0x3a   : > { %1162 = vmatpush3.msra.mxu0 %v704_v46 }
  0x3b   : > { %1163 = vmatprep.subr.mxu0 %v703_v32 }
  0x3c   : > { %1164 = vmatpush3.msra.mxu0 %v703_v32 }
  0x3d   : > { %1165 = vmatprep.subr.mxu0 %v702_v33 }
  0x3e   : > { %1166 = vmatpush3.msra.mxu0 %v702_v33 }
  0x3f   : > { %1167 = vmatprep.subr.mxu0 %v701_v34 }
  0x40   : > { %1168 = vmatpush3.msra.mxu0 %v701_v34 }
  0xd1   : > { %v1059_v48 = vpop.f32.mrf.mxu0 }
  0xd2   : > { %v428_v49 = vadd.f32 %v1059_v48, %v950_v47 }
  0xd3   : > { %v422_v50 = vpop.f32.mrf.mxu0 }
  0xd4   : > { %v423_v51 = vadd.f32 %v950_v47, %v422_v50  ;;  %v502_v54 = vmax.f32 %v428_v49, 0.0 }
  0xd5   : > { %v1062_v52 = vpop.f32.mrf.mxu0 }
  0xd6   : > { %v501_v53 = vmax.f32 %v423_v51, 0.0  ;;  %v438_v55 = vadd.f32 %v1062_v52, %v950_v47 }
  0xd7   : > { %v432_v56 = vpop.f32.mrf.mxu0 }
  0xd8   : > { %v433_v57 = vadd.f32 %v950_v47, %v432_v56  ;;  %1113 = vmatprep.mubr.f32.mxu1 %v501_v53  ;;  %v504_v60 = vmax.f32 %v438_v55, 0.0 }
  0xd9   : > { %v1065_v58 = vpop.f32.mrf.mxu0  ;;  %1114 = vmatmul.mubr.f32.vlgmr.msra.gmra.mxu1 %v502_v54 }
  0xda   : > { %v503_v59 = vmax.f32 %v433_v57, 0.0  ;;  %v448_v61 = vadd.f32 %v1065_v58, %v950_v47 }
  0xdb   : > { %v442_v62 = vpop.f32.mrf.mxu0 }
  0xdc   : > { %v443_v63 = vadd.f32 %v950_v47, %v442_v62  ;;  %1116 = vmatprep.mubr.f32.mxu1 %v503_v59  ;;  %v506_v2 = vmax.f32 %v448_v61, 0.0 }
  0xdd   : > { %v1068_v0 = vpop.f32.mrf.mxu0  ;;  %1117 = vmatmul.mubr.f32.gmra.mxu1 %v504_v60 }
  0xde   : > { %v505_v1 = vmax.f32 %v443_v63, 0.0  ;;  %v458_v3 = vadd.f32 %v1068_v0, %v950_v47 }
  0xdf   : > { %v452_v4 = vpop.f32.mrf.mxu0 }
  0xe0   : > { %v453_v5 = vadd.f32 %v950_v47, %v452_v4  ;;  %1119 = vmatprep.mubr.f32.mxu1 %v505_v1  ;;  %v508_v8 = vmax.f32 %v458_v3, 0.0 }
  0xe1   : > { %v1071_v6 = vpop.f32.mrf.mxu0  ;;  %1120 = vmatmul.mubr.f32.gmra.mxu1 %v506_v2 }
  0xe2   : > { %v507_v7 = vmax.f32 %v453_v5, 0.0  ;;  %v468_v9 = vadd.f32 %v1071_v6, %v950_v47 }
  0xe3   : > { %v462_v10 = vpop.f32.mrf.mxu0 }
  0xe4   : > { %v463_v11 = vadd.f32 %v950_v47, %v462_v10  ;;  %1122 = vmatprep.mubr.f32.mxu1 %v507_v7  ;;  %v510_v14 = vmax.f32 %v468_v9, 0.0 }
  0xe5   : > { %v1074_v12 = vpop.f32.mrf.mxu0  ;;  %1123 = vmatmul.mubr.f32.gmra.mxu1 %v508_v8 }
  0xe6   : > { %v509_v13 = vmax.f32 %v463_v11, 0.0  ;;  %v478_v15 = vadd.f32 %v1074_v12, %v950_v47 }
  0xe7   : > { %v472_v16 = vpop.f32.mrf.mxu0 }
  0xe8   : > { %v473_v17 = vadd.f32 %v950_v47, %v472_v16  ;;  %1125 = vmatprep.mubr.f32.mxu1 %v509_v13  ;;  %v512_v20 = vmax.f32 %v478_v15, 0.0 }
  0xe9   : > { %v1077_v18 = vpop.f32.mrf.mxu0  ;;  %1126 = vmatmul.mubr.f32.gmra.mxu1 %v510_v14 }
  0xea   : > { %v511_v19 = vmax.f32 %v473_v17, 0.0  ;;  %v488_v21 = vadd.f32 %v1077_v18, %v950_v47 }
  0xeb   : > { %v482_v22 = vpop.f32.mrf.mxu0 }
  0xec   : > { %v483_v23 = vadd.f32 %v950_v47, %v482_v22  ;;  %1128 = vmatprep.mubr.f32.mxu1 %v511_v19  ;;  %v514_v26 = vmax.f32 %v488_v21, 0.0 }
  0xed   : > { %v1080_v24 = vpop.f32.mrf.mxu0  ;;  %1129 = vmatmul.mubr.f32.gmra.mxu1 %v512_v20  ;;  %v968_v20 = vld [vmem:[%s1442_s6] ss:$0 sm:$0xff] }
  0xee   : > { %v513_v25 = vmax.f32 %v483_v23, 0.0  ;;  %v498_v27 = vadd.f32 %v1080_v24, %v950_v47 }
  0xef   : > { %v492_v28 = vpop.f32.mrf.mxu0 }
  0xf0   : > { %v493_v29 = vadd.f32 %v950_v47, %v492_v28  ;;  %1131 = vmatprep.mubr.f32.mxu1 %v513_v25  ;;  %v516_v31 = vmax.f32 %v498_v27, 0.0 }
  0xf1   : > { %1132 = vmatmul.mubr.f32.gmra.mxu1 %v514_v26 }
  0xf2   : > { %v515_v30 = vmax.f32 %v493_v29, 0.0 }
  0xf4   : > { %1134 = vmatprep.mubr.f32.mxu1 %v515_v30 }
  0xf5   : > { %1135 = vmatmul.mubr.f32.gmra.mxu1 %v516_v31 }
 0x199   : > { %v1115_v36 = vpop.f32.mrf.mxu1 }
 0x19a   : > { %v612_v37 = vadd.f32 %v1115_v36, %v967_v35 }
 0x19b   : > { %v606_v38 = vpop.f32.mrf.mxu1 }
 0x19c   : > { %v607_v39 = vadd.f32 %v967_v35, %v606_v38  ;;  %v686_v42 = vmax.f32 %v612_v37, 0.0 }
 0x19d   : > { %v1118_v40 = vpop.f32.mrf.mxu1 }
 0x19e   : > { %v685_v41 = vmax.f32 %v607_v39, 0.0  ;;  %v622_v43 = vadd.f32 %v1118_v40, %v967_v35 }
 0x19f   : > { %v616_v44 = vpop.f32.mrf.mxu1 }
 0x1a0   : > { %v617_v45 = vadd.f32 %v967_v35, %v616_v44  ;;  %1169 = vmatprep.mubr.f32.mxu0 %v685_v41  ;;  %v688_v48 = vmax.f32 %v622_v43, 0.0 }
 0x1a1   : > { %v1121_v46 = vpop.f32.mrf.mxu1  ;;  %1170 = vmatmul.mubr.f32.vlgmr.msra.gmra.mxu0 %v686_v42 }
 0x1a2   : > { %v687_v47 = vmax.f32 %v617_v45, 0.0  ;;  %v632_v49 = vadd.f32 %v1121_v46, %v967_v35 }
 0x1a3   : > { %v626_v50 = vpop.f32.mrf.mxu1 }
 0x1a4   : > { %v627_v51 = vadd.f32 %v967_v35, %v626_v50  ;;  %1172 = vmatprep.mubr.f32.mxu0 %v687_v47  ;;  %v690_v54 = vmax.f32 %v632_v49, 0.0 }
 0x1a5   : > { %v1124_v52 = vpop.f32.mrf.mxu1  ;;  %1173 = vmatmul.mubr.f32.gmra.mxu0 %v688_v48 }
 0x1a6   : > { %v689_v53 = vmax.f32 %v627_v51, 0.0  ;;  %v642_v55 = vadd.f32 %v1124_v52, %v967_v35 }
 0x1a7   : > { %v636_v56 = vpop.f32.mrf.mxu1 }
 0x1a8   : > { %v637_v57 = vadd.f32 %v967_v35, %v636_v56  ;;  %1175 = vmatprep.mubr.f32.mxu0 %v689_v53  ;;  %v692_v60 = vmax.f32 %v642_v55, 0.0 }
 0x1a9   : > { %v1127_v58 = vpop.f32.mrf.mxu1  ;;  %1176 = vmatmul.mubr.f32.gmra.mxu0 %v690_v54 }
 0x1aa   : > { %v691_v59 = vmax.f32 %v637_v57, 0.0  ;;  %v652_v61 = vadd.f32 %v1127_v58, %v967_v35 }
 0x1ab   : > { %v646_v62 = vpop.f32.mrf.mxu1 }
 0x1ac   : > { %v647_v63 = vadd.f32 %v967_v35, %v646_v62  ;;  %1178 = vmatprep.mubr.f32.mxu0 %v691_v59  ;;  %v694_v2 = vmax.f32 %v652_v61, 0.0 }
 0x1ad   : > { %v1130_v0 = vpop.f32.mrf.mxu1  ;;  %1179 = vmatmul.mubr.f32.gmra.mxu0 %v692_v60 }
 0x1ae   : > { %v693_v1 = vmax.f32 %v647_v63, 0.0  ;;  %v662_v3 = vadd.f32 %v1130_v0, %v967_v35 }
 0x1af   : > { %v656_v4 = vpop.f32.mrf.mxu1 }
 0x1b0   : > { %v657_v5 = vadd.f32 %v967_v35, %v656_v4  ;;  %1181 = vmatprep.mubr.f32.mxu0 %v693_v1  ;;  %v696_v8 = vmax.f32 %v662_v3, 0.0 }
 0x1b1   : > { %v1133_v6 = vpop.f32.mrf.mxu1  ;;  %1182 = vmatmul.mubr.f32.gmra.mxu0 %v694_v2 }
 0x1b2   : > { %v695_v7 = vmax.f32 %v657_v5, 0.0  ;;  %v672_v9 = vadd.f32 %v1133_v6, %v967_v35 }
 0x1b3   : > { %v666_v10 = vpop.f32.mrf.mxu1 }
 0x1b4   : > { %v667_v11 = vadd.f32 %v967_v35, %v666_v10  ;;  %1184 = vmatprep.mubr.f32.mxu0 %v695_v7  ;;  %v698_v14 = vmax.f32 %v672_v9, 0.0 }
 0x1b5   : > { %v1136_v12 = vpop.f32.mrf.mxu1  ;;  %1185 = vmatmul.mubr.f32.gmra.mxu0 %v696_v8 }
 0x1b6   : > { %v697_v13 = vmax.f32 %v667_v11, 0.0  ;;  %v682_v15 = vadd.f32 %v1136_v12, %v967_v35 }
 0x1b7   : > { %v676_v16 = vpop.f32.mrf.mxu1 }
 0x1b8   : > { %v677_v17 = vadd.f32 %v967_v35, %v676_v16  ;;  %1187 = vmatprep.mubr.f32.mxu0 %v697_v13  ;;  %v700_v19 = vmax.f32 %v682_v15, 0.0 }
 0x1b9   : > { %1188 = vmatmul.mubr.f32.gmra.mxu0 %v698_v14 }
 0x1ba   : > { %v699_v18 = vmax.f32 %v677_v17, 0.0 }
 0x1bc   : > { %1190 = vmatprep.mubr.f32.mxu0 %v699_v18 }
 0x1bd   : > { %1191 = vmatmul.mubr.f32.gmra.mxu0 %v700_v19 }
 0x261   : > { %v1171_v21 = vpop.f32.mrf.mxu0 }
 0x262   : > { %v796_v22 = vadd.f32 %v1171_v21, %v968_v20 }
 0x263   : > { %v790_v23 = vpop.f32.mrf.mxu0 }
 0x264   : > { %870 = vst [vmem:[%s1415_s25 + $0x8] sm:$0xff] %v796_v22  ;;  %v791_v24 = vadd.f32 %v968_v20, %v790_v23 }
 0x265   : > { %v1174_v25 = vpop.f32.mrf.mxu0 }
 0x266   : > { %869 = vst [vmem:[%s1415_s25] sm:$0xff] %v791_v24  ;;  %v806_v26 = vadd.f32 %v1174_v25, %v968_v20 }
 0x267   : > { %v800_v27 = vpop.f32.mrf.mxu0 }
 0x268   : > { %872 = vst [vmem:[%s1415_s25 + $0x18] sm:$0xff] %v806_v26  ;;  %v801_v28 = vadd.f32 %v968_v20, %v800_v27 }
 0x269   : > { %v1177_v29 = vpop.f32.mrf.mxu0 }
 0x26a   : > { %871 = vst [vmem:[%s1415_s25 + $0x10] sm:$0xff] %v801_v28  ;;  %v816_v30 = vadd.f32 %v1177_v29, %v968_v20 }
 0x26b   : > { %v810_v31 = vpop.f32.mrf.mxu0 }
 0x26c   : > { %874 = vst [vmem:[%s1415_s25 + $0x28] sm:$0xff] %v816_v30  ;;  %v811_v32 = vadd.f32 %v968_v20, %v810_v31 }
 0x26d   : > { %v1180_v33 = vpop.f32.mrf.mxu0 }
 0x26e   : > { %873 = vst [vmem:[%s1415_s25 + $0x20] sm:$0xff] %v811_v32  ;;  %v826_v34 = vadd.f32 %v1180_v33, %v968_v20 }
 0x26f   : > { %v820_v35 = vpop.f32.mrf.mxu0 }
 0x270   : > { %876 = vst [vmem:[%s1415_s25 + $0x38] sm:$0xff] %v826_v34  ;;  %v821_v36 = vadd.f32 %v968_v20, %v820_v35 }
 0x271   : > { %v1183_v37 = vpop.f32.mrf.mxu0 }
 0x272   : > { %875 = vst [vmem:[%s1415_s25 + $0x30] sm:$0xff] %v821_v36  ;;  %v836_v38 = vadd.f32 %v1183_v37, %v968_v20 }
 0x273   : > { %v830_v39 = vpop.f32.mrf.mxu0 }
 0x274   : > { %878 = vst [vmem:[%s1415_s25 + $0x48] sm:$0xff] %v836_v38  ;;  %v831_v40 = vadd.f32 %v968_v20, %v830_v39 }
 0x275   : > { %v1186_v41 = vpop.f32.mrf.mxu0 }
 0x276   : > { %877 = vst [vmem:[%s1415_s25 + $0x40] sm:$0xff] %v831_v40  ;;  %v846_v42 = vadd.f32 %v1186_v41, %v968_v20 }
 0x277   : > { %v840_v43 = vpop.f32.mrf.mxu0 }
 0x278   : > { %880 = vst [vmem:[%s1415_s25 + $0x58] sm:$0xff] %v846_v42  ;;  %v841_v44 = vadd.f32 %v968_v20, %v840_v43 }
 0x279   : > { %v1189_v45 = vpop.f32.mrf.mxu0 }
 0x27a   : > { %879 = vst [vmem:[%s1415_s25 + $0x50] sm:$0xff] %v841_v44  ;;  %v856_v46 = vadd.f32 %v1189_v45, %v968_v20 }
 0x27b   : > { %v850_v47 = vpop.f32.mrf.mxu0 }
 0x27c   : > { %882 = vst [vmem:[%s1415_s25 + $0x68] sm:$0xff] %v856_v46  ;;  %v851_v48 = vadd.f32 %v968_v20, %v850_v47 }
 0x27d   : > { %v1192_v49 = vpop.f32.mrf.mxu0 }
 0x27e   : > { %881 = vst [vmem:[%s1415_s25 + $0x60] sm:$0xff] %v851_v48  ;;  %v866_v50 = vadd.f32 %v1192_v49, %v968_v20 }
 0x27f   : > { %v860_v51 = vpop.f32.mrf.mxu0 }
 0x280   : > { %884 = vst [vmem:[%s1415_s25 + $0x78] sm:$0xff] %v866_v50  ;;  %v861_v52 = vadd.f32 %v968_v20, %v860_v51 }
 0x282   : > { %883 = vst [vmem:[%s1415_s25 + $0x70] sm:$0xff] %v861_v52 }
 0x283 PF: > { %s17_s24 = sadd.s32 1, %s1207_s24  }
 0x284   : > { %p14_p4 = scmp.ge.s32.totalorder %s17_s24, 4  }
 0x286   :  { %16 = sbr.rel (!%p14_p4) target bundleno = 1 (0x1), region = 78 }

</bundles_post_ra>
